<compile_context>
chip_gen: v7x
topology: tpu7x:2x2x1
jax: 0.10.0
libtpu: 0.0.40
codegen_flags: <defaults>
</compile_context>

<pallas_src>
import jax
import jax.numpy as jnp
from jax.experimental import pallas as pl
from jax.experimental.pallas import tpu as pltpu


def _round_up(x, m):
    return ((x + m - 1) // m) * m


def _t2_kernel(cA_ref, cB_ref, s_ref, t2_ref):
    # cA_ref : (2, naoA, B)   [0]=HOMO_A, [1]=LUMO_A   (molecule batch in lanes)
    # cB_ref : (2, naoB, B)   [0]=HOMO_B, [1]=LUMO_B
    # s_ref  : (naoA, naoB, B)
    # t2_ref : (1, B)
    s = s_ref[...]
    hA = cA_ref[0]                                   # (naoA, B)
    lA = cA_ref[1]
    hB = cB_ref[0]                                   # (naoB, B)
    lB = cB_ref[1]

    # Contract the monomer-A AO index first: reduction over the MAJOR axis of a
    # 3-D value — pure VPU slab multiply-adds, batch fully populating the lanes.
    p = jnp.sum(s * hA[:, None, :], axis=0)          # (naoB, B)  p[n,b]=sum_m hA*S
    q = jnp.sum(s * lA[:, None, :], axis=0)          # (naoB, B)  q[n,b]=sum_m lA*S

    # Contract the monomer-B AO index: a cheap ~naoB-row sublane reduce.
    T00 = jnp.sum(p * hB, axis=0, keepdims=True)     # (1, B)
    T01 = jnp.sum(p * lB, axis=0, keepdims=True)
    T10 = jnp.sum(q * hB, axis=0, keepdims=True)
    T11 = jnp.sum(q * lB, axis=0, keepdims=True)

    val = T10 * T11 - T01 * T00                      # keep cancellation in f32
    t2_ref[...] = val * val


def _choose_block(nmol, naoA, naoB, block_mols):
    """Pick the molecules-per-grid-step block B and the padded batch size."""
    nmol8 = _round_up(nmol, 8)
    # The double-buffered S tile dominates VMEM; keep it under ~40 MiB so the
    # whole pipeline fits v7x's 64 MiB physical VMEM with headroom (v5e/v6e
    # have 128 MiB and simply benefit from the larger tiles).
    bytes_per_mol = naoA * _round_up(naoB, 8) * 4
    budget = 40 << 20
    cap = max(128, min(2048, budget // (2 * bytes_per_mol)))
    if block_mols is not None:
        cap = min(cap, max(8, int(block_mols)))

    if nmol8 < 256 and (nmol8 <= 128 or 2 * nmol8 * bytes_per_mol <= budget):
        # Small batch: one grid step over the whole (8-padded) batch — the block
        # equals the full lane extent, so no 128-lane divisibility is required.
        return nmol8, nmol8

    # Lane-dense multi-block path: B is a multiple of 128 (unmasked stores,
    # clean (8,128) tiling of the lane dimension).
    B = max(128, min((cap // 128) * 128, _round_up(nmol, 128)))
    if pl.cdiv(nmol, B) < 2:
        # Guarantee >= 2 grid blocks so the "parallel" axis shards across both
        # TensorCores on v7x, without inflating the batch padding.
        B = max(128, (_round_up(nmol, 128) // 2 // 128) * 128)
    nmol_p = _round_up(nmol, B)
    return B, nmol_p


def singlet_fission_t2(cA, cB, S_AB, *, block_mols=None):
    """Compute |T_RP|^2 per molecule with a Pallas TPU kernel.

    Batch-last ("lanes = molecules") layout:
      cA:   (2, naoA, nmol)  stacked [HOMO_A, LUMO_A] coefficients of monomer A
      cB:   (2, naoB, nmol)  stacked [HOMO_B, LUMO_B] coefficients of monomer B
      S_AB: (naoA, naoB, nmol)  AO overlap block between monomers A and B
    returns: (nmol,) float32
    """
    cA = jnp.asarray(cA, jnp.float32)
    cB = jnp.asarray(cB, jnp.float32)
    S_AB = jnp.asarray(S_AB, jnp.float32)

    _, naoA, nmol = cA.shape
    _, naoB, _ = cB.shape
    assert cA.shape == (2, naoA, nmol)
    assert cB.shape == (2, naoB, nmol)
    assert S_AB.shape == (naoA, naoB, nmol)

    B, nmol_p = _choose_block(nmol, naoA, naoB, block_mols)

    # Pad only the (cheap, bounded) molecule/lane axis so the grid divides evenly.
    if nmol_p != nmol:
        pad = nmol_p - nmol
        cA = jnp.pad(cA, ((0, 0), (0, 0), (0, pad)))
        cB = jnp.pad(cB, ((0, 0), (0, 0), (0, pad)))
        S_AB = jnp.pad(S_AB, ((0, 0), (0, 0), (0, pad)))

    nblk = nmol_p // B
    out = pl.pallas_call(
        _t2_kernel,
        out_shape=jax.ShapeDtypeStruct((1, nmol_p), jnp.float32),
        grid=(nblk,),
        in_specs=[
            pl.BlockSpec((2, naoA, B), lambda i: (0, 0, i)),
            pl.BlockSpec((2, naoB, B), lambda i: (0, 0, i)),
            pl.BlockSpec((naoA, naoB, B), lambda i: (0, 0, i)),
        ],
        out_specs=pl.BlockSpec((1, B), lambda i: (0, i)),
        compiler_params=pltpu.CompilerParams(
            dimension_semantics=("parallel",),
            # Tiles are sized to <= ~42 MiB total; 48 MiB is safe on v7x (64 MiB
            # physical) and raises the conservative scoped default on v5e/v6e.
            vmem_limit_bytes=48 * 1024 * 1024,
        ),
    )(cA, cB, S_AB)
    return out[0, :nmol]


def singlet_fission_t2_torch_layout(hA, lA, hB, lB, S_AB, **kw):
    """Compatibility wrapper for the PyTorch-module layout
    (hA/lA:(nmol,naoA), hB/lB:(nmol,naoB), S_AB:(nmol,naoA,naoB)).
    Does one HBM transpose pass; prefer producing batch-last data directly."""
    cA = jnp.stack((hA, lA), axis=0).transpose(0, 2, 1)   # (2, naoA, nmol)
    cB = jnp.stack((hB, lB), axis=0).transpose(0, 2, 1)   # (2, naoB, nmol)
    S = jnp.transpose(S_AB, (1, 2, 0))                    # (naoA, naoB, nmol)
    return singlet_fission_t2(cA, cB, S, **kw)


def _reference_t2(cA, cB, S_AB):
    """Plain-JAX reference mirroring the PyTorch double loop (batch-last layout)."""
    T = jnp.einsum("imb,jnb,mnb->ijb", cA, cB, S_AB)      # (2, 2, nmol)
    return (T[1, 0] * T[1, 1] - T[0, 1] * T[0, 0]) ** 2


if __name__ == "__main__":
    key = jax.random.PRNGKey(0)

    def _make_inputs(k, nmol, naoA, naoB):
        kA, kB, kS = jax.random.split(k, 3)
        cA = jax.random.normal(kA, (2, naoA, nmol), jnp.float32)
        cA = cA / jnp.linalg.norm(cA, axis=1, keepdims=True)
        cB = jax.random.normal(kB, (2, naoB, nmol), jnp.float32)
        cB = cB / jnp.linalg.norm(cB, axis=1, keepdims=True)
        S = 0.1 * jax.random.normal(kS, (naoA, naoB, nmol), jnp.float32)
        return cA, cB, S

    k1, k2, k3 = jax.random.split(key, 3)

    # Case 1: small dimer batch — nmol=2, 6 heavy atoms per monomer
    # (4 valence AOs each) -> naoA = naoB = 24. Single-block path.
    cA1, cB1, S1 = _make_inputs(k1, 2, 24, 24)
    t2 = jax.block_until_ready(singlet_fission_t2(cA1, cB1, S1))
    t2_ref = _reference_t2(cA1, cB1, S1)
    assert t2.shape == (2,)
    assert jnp.allclose(t2, t2_ref, rtol=1e-5, atol=1e-7), (t2, t2_ref)

    # Case 2: ragged batch with asymmetric AO counts and a user block hint;
    # also exercises the PyTorch-layout compatibility wrapper.
    cA2, cB2, S2 = _make_inputs(k2, 37, 24, 20)
    t2b = jax.block_until_ready(singlet_fission_t2(cA2, cB2, S2, block_mols=16))
    t2b_ref = _reference_t2(cA2, cB2, S2)
    assert t2b.shape == (37,)
    assert jnp.allclose(t2b, t2b_ref, rtol=1e-5, atol=1e-7), (t2b, t2b_ref)

    t2b_compat = jax.block_until_ready(
        singlet_fission_t2_torch_layout(
            cA2[0].T, cA2[1].T, cB2[0].T, cB2[1].T, jnp.transpose(S2, (2, 0, 1))
        )
    )
    assert jnp.allclose(t2b_compat, t2b_ref, rtol=1e-5, atol=1e-7)

    # Case 3: larger batch exercising the lane-dense multi-block path
    # (B = 128, 3 grid blocks, molecule-axis padding, megacore-friendly grid).
    cA3, cB3, S3 = _make_inputs(k3, 300, 24, 20)
    t2c = jax.block_until_ready(singlet_fission_t2(cA3, cB3, S3))
    t2c_ref = _reference_t2(cA3, cB3, S3)
    assert t2c.shape == (300,)
    assert jnp.allclose(t2c, t2c_ref, rtol=1e-5, atol=1e-7), (t2c, t2c_ref)

    print("KERNEL_OK")
</pallas_src>

<mosaic_0001>
module attributes {stable_mosaic.version = 11 : i64} {
  func.func @_t2_kernel(%arg0: i32, %arg1: memref<2x24x8xf32, #tpu.memory_space<vmem>>, %arg2: memref<2x24x8xf32, #tpu.memory_space<vmem>>, %arg3: memref<24x24x8xf32, #tpu.memory_space<vmem>>, %arg4: memref<1x8xf32, #tpu.memory_space<vmem>>) attributes {dimension_semantics = [#tpu.dimension_semantics<parallel>], iteration_bounds = array<i64: 1>, scalar_prefetch = 0 : i64, scratch_operands = 0 : i64, tpu.core_type = #tpu.core_type<tc>, window_params = [{transform_indices = @transform_0, window_bounds = array<i64: 2, 24, 8>}, {transform_indices = @transform_1, window_bounds = array<i64: 2, 24, 8>}, {transform_indices = @transform_2, window_bounds = array<i64: 24, 24, 8>}, {transform_indices = @transform_3, window_bounds = array<i64: 1, 8>}]} {
    %c0 = arith.constant 0 : index
    %c0_0 = arith.constant 0 : index
    %c0_1 = arith.constant 0 : index
    %0 = vector.load %arg3[%c0, %c0_0, %c0_1] : memref<24x24x8xf32, #tpu.memory_space<vmem>>, vector<24x24x8xf32>
    %c0_2 = arith.constant 0 : index
    %c0_3 = arith.constant 0 : index
    %c0_4 = arith.constant 0 : index
    %1 = vector.load %arg1[%c0_2, %c0_3, %c0_4] : memref<2x24x8xf32, #tpu.memory_space<vmem>>, vector<1x24x8xf32>
    %2 = vector.shape_cast %1 : vector<1x24x8xf32> to vector<24x8xf32>
    %c1 = arith.constant 1 : index
    %c0_5 = arith.constant 0 : index
    %c0_6 = arith.constant 0 : index
    %3 = vector.load %arg1[%c1, %c0_5, %c0_6] : memref<2x24x8xf32, #tpu.memory_space<vmem>>, vector<1x24x8xf32>
    %4 = vector.shape_cast %3 : vector<1x24x8xf32> to vector<24x8xf32>
    %c0_7 = arith.constant 0 : index
    %c0_8 = arith.constant 0 : index
    %c0_9 = arith.constant 0 : index
    %5 = vector.load %arg2[%c0_7, %c0_8, %c0_9] : memref<2x24x8xf32, #tpu.memory_space<vmem>>, vector<1x24x8xf32>
    %6 = vector.shape_cast %5 : vector<1x24x8xf32> to vector<24x8xf32>
    %c1_10 = arith.constant 1 : index
    %c0_11 = arith.constant 0 : index
    %c0_12 = arith.constant 0 : index
    %7 = vector.load %arg2[%c1_10, %c0_11, %c0_12] : memref<2x24x8xf32, #tpu.memory_space<vmem>>, vector<1x24x8xf32>
    %8 = vector.shape_cast %7 : vector<1x24x8xf32> to vector<24x8xf32>
    %9 = vector.shape_cast %2 : vector<24x8xf32> to vector<24x1x8xf32>
    %10 = vector.broadcast %9 : vector<24x1x8xf32> to vector<24x24x8xf32>
    %11 = arith.mulf %0, %10 : vector<24x24x8xf32>
    %cst = arith.constant dense<0.000000e+00> : vector<24x8xf32>
    %12 = vector.multi_reduction <add>, %11, %cst [0] : vector<24x24x8xf32> to vector<24x8xf32>
    %13 = vector.shape_cast %4 : vector<24x8xf32> to vector<24x1x8xf32>
    %14 = vector.broadcast %13 : vector<24x1x8xf32> to vector<24x24x8xf32>
    %15 = arith.mulf %0, %14 : vector<24x24x8xf32>
    %cst_13 = arith.constant dense<0.000000e+00> : vector<24x8xf32>
    %16 = vector.multi_reduction <add>, %15, %cst_13 [0] : vector<24x24x8xf32> to vector<24x8xf32>
    %17 = arith.mulf %12, %6 : vector<24x8xf32>
    %cst_14 = arith.constant dense<0.000000e+00> : vector<8xf32>
    %18 = vector.multi_reduction <add>, %17, %cst_14 [0] : vector<24x8xf32> to vector<8xf32>
    %19 = vector.shape_cast %18 : vector<8xf32> to vector<1x8xf32>
    %20 = arith.mulf %12, %8 : vector<24x8xf32>
    %cst_15 = arith.constant dense<0.000000e+00> : vector<8xf32>
    %21 = vector.multi_reduction <add>, %20, %cst_15 [0] : vector<24x8xf32> to vector<8xf32>
    %22 = vector.shape_cast %21 : vector<8xf32> to vector<1x8xf32>
    %23 = arith.mulf %16, %6 : vector<24x8xf32>
    %cst_16 = arith.constant dense<0.000000e+00> : vector<8xf32>
    %24 = vector.multi_reduction <add>, %23, %cst_16 [0] : vector<24x8xf32> to vector<8xf32>
    %25 = vector.shape_cast %24 : vector<8xf32> to vector<1x8xf32>
    %26 = arith.mulf %16, %8 : vector<24x8xf32>
    %cst_17 = arith.constant dense<0.000000e+00> : vector<8xf32>
    %27 = vector.multi_reduction <add>, %26, %cst_17 [0] : vector<24x8xf32> to vector<8xf32>
    %28 = vector.shape_cast %27 : vector<8xf32> to vector<1x8xf32>
    %29 = arith.mulf %25, %28 : vector<1x8xf32>
    %30 = arith.mulf %22, %19 : vector<1x8xf32>
    %31 = arith.subf %29, %30 : vector<1x8xf32>
    %32 = arith.mulf %31, %31 : vector<1x8xf32>
    %c0_18 = arith.constant 0 : index
    %c0_19 = arith.constant 0 : index
    %33 = vector.load %arg4[%c0_18, %c0_19] : memref<1x8xf32, #tpu.memory_space<vmem>>, vector<1x8xf32>
    tpu.vector_store %arg4[%c0_18, %c0_19], %32 {strides = array<i32>} : memref<1x8xf32, #tpu.memory_space<vmem>>, vector<1x8xf32>,
    return
  }
  func.func @transform_0(%arg0: i32) -> (i32, i32, i32) {
    %c0_i32 = arith.constant 0 : i32
    %c0_i32_0 = arith.constant 0 : i32
    %c0_i32_1 = arith.constant 0 : i32
    return %c0_i32, %c0_i32_0, %arg0 : i32, i32, i32
  }
  func.func @transform_1(%arg0: i32) -> (i32, i32, i32) {
    %c0_i32 = arith.constant 0 : i32
    %c0_i32_0 = arith.constant 0 : i32
    %c0_i32_1 = arith.constant 0 : i32
    return %c0_i32, %c0_i32_0, %arg0 : i32, i32, i32
  }
  func.func @transform_2(%arg0: i32) -> (i32, i32, i32) {
    %c0_i32 = arith.constant 0 : i32
    %c0_i32_0 = arith.constant 0 : i32
    %c0_i32_1 = arith.constant 0 : i32
    return %c0_i32, %c0_i32_0, %arg0 : i32, i32, i32
  }
  func.func @transform_3(%arg0: i32) -> (i32, i32) {
    %c0_i32 = arith.constant 0 : i32
    %c0_i32_0 = arith.constant 0 : i32
    return %c0_i32, %arg0 : i32, i32
  }
}

</mosaic_0001>

<bundles_post_ra>
// kernel: tpu_custom_call.1
= control target key start
LH: loop header
LB: loop body
LE: loop exit
PB: predicated region body
PF: predicated region fallthrough
CT: control target
= control target key end

     0   :  { %8 = vsyncpa [#allocation3], 0  ;;  %v1182_v0 = vmov 1966171168   ;;  %v108_v2 = vlaneseq  ;;  %vm443_vm0 = vcmask 64512   ;;  %vm1128_vm1 = vcmask 57344   ;;  %s2487_s0 = inlined_call_operand.vmem [shape: f32[2,24,8], index: 0, kind: input, shape index: {}]   ;;  %s2488_s1 = inlined_call_operand.vmem [shape: f32[2,24,8], index: 1, kind: input, shape index: {}]   ;;  %s2489_s2 = inlined_call_operand.vmem [shape: f32[24,24,8], index: 2, kind: input, shape index: {}]   ;;  %s2490_s3 = inlined_call_operand.hbm [shape: f32[1,8], index: 3, kind: output, shape index: {}]  }
   0x1   :  { %v106_v1 = vunpack.c.l.s4 %v1182_v0  ;;  %v87_v5 = vld [vmem:[%s2487_s0] sm:$0xff]  ;;  %v88_v7 = vld [vmem:[%s2487_s0 + $0x8] sm:$0xff]  ;;  %v89_v9 = vld [vmem:[%s2487_s0 + $0x10] sm:$0xff] }
   0x2   :  { %v109_v4 = vshrl.u32 %v108_v2, 7  ;;  %v104_v8 = vcombine.high %v87_v5, %v87_v5  ;;  %v153_v10 = vcombine.high %v88_v7, %v88_v7  ;;  %v202_v11 = vcombine.high %v89_v9, %v89_v9  ;;  %v1225_v20 = vld [vmem:[%s2487_s0 + $0x18] sm:$0xff]  ;;  %v1255_v58 = vld [vmem:[%s2489_s2] sm:$0xff]  ;;  %v1260_v59 = vld [vmem:[%s2489_s2 + $0x8] sm:$0xff] }
   0x3   :  { %v107_v3 = vunpack.c.0.s8 %v106_v1  ;;  %2560 = vst [vmem:[#allocation5_spill] sm:$0xff] %v1255_v58  ;;  %2561 = vst [vmem:[#allocation6_spill] sm:$0xff] %v1260_v59  ;;  %v1265_v60 = vld [vmem:[%s2489_s2 + $0x10] sm:$0xff]  ;;  %v1282_v1 = vld [vmem:[%s2489_s2 + $0x18] sm:$0xff] }
   0x4   :  { %v1227_v24 = vsub.s32 0, %v109_v4  ;;  %2562 = vst [vmem:[#allocation7_spill] sm:$0xff] %v1265_v60  ;;  %2563 = vst [vmem:[#allocation8_spill] sm:$0xff] %v1282_v1  ;;  %v1287_v2 = vld [vmem:[%s2489_s2 + $0x20] sm:$0xff] }
   0x5   :  { %v1207_v6 = vsub.s32 %v107_v3, %v109_v4  ;;  %2564 = vst [vmem:[#allocation9_spill] sm:$0xff] %v1287_v2  ;;  %v1292_v3 = vld [vmem:[%s2489_s2 + $0x28] sm:$0xff] }
   0x6   :  { %2565 = vst [vmem:[#allocation10_spill] sm:$0xff] %v1292_v3 }
   0x7   :  { %v111_v12 = vrot.slane %v87_v5, %v1207_v6  ;;  %v118_v13 = vrot.slane %v104_v8, %v1207_v6  ;;  %v160_v14 = vrot.slane %v88_v7, %v1207_v6  ;;  %v167_v15 = vrot.slane %v153_v10, %v1207_v6  ;;  %v1314_v10 = vld [vmem:[%s2489_s2 + $0x38] sm:$0xff] }
   0x8   :  { %v209_v16 = vrot.slane %v89_v9, %v1207_v6  ;;  %v216_v17 = vrot.slane %v202_v11, %v1207_v6  ;;  %v1237_v33 = vrot.slane %v1225_v20, %v1207_v6  ;;  %v1309_v9 = vld [vmem:[%s2489_s2 + $0x30] sm:$0xff]  ;;  %2567 = vst [vmem:[#allocation12_spill] sm:$0xff] %v1314_v10  ;;  %v1319_v11 = vld [vmem:[%s2489_s2 + $0x40] sm:$0xff] }
   0x9   :  { %v119_v18 = vcombine.high %v111_v12, %v111_v12  ;;  %v127_v19 = vrot.slane %v111_v12, %v1207_v6  ;;  %v120_v21 = vcombine.high %v118_v13, %v118_v13  ;;  %v168_v22 = vcombine.high %v160_v14, %v160_v14  ;;  %2566 = vst [vmem:[#allocation11_spill] sm:$0xff] %v1309_v9 }
   0xa   :  { %v169_v23 = vcombine.high %v167_v15, %v167_v15  ;;  %v134_v26 = vrot.slane %v118_v13, %v1207_v6  ;;  %v176_v27 = vrot.slane %v160_v14, %v1207_v6  ;;  %v217_v28 = vcombine.high %v209_v16, %v209_v16  ;;  %2568 = vst [vmem:[#allocation13_spill] sm:$0xff] %v1319_v11 }
   0xb   :  { %v218_v29 = vcombine.high %v216_v17, %v216_v17  ;;  %v141_v30 = vrot.slane %v119_v18, %v1207_v6  ;;  %v149_v31 = vcombine.high %v127_v19, %v127_v19  ;;  %v183_v32 = vrot.slane %v167_v15, %v1207_v6  ;;  %v1346_v18 = vld [vmem:[%s2489_s2 + $0x58] sm:$0xff] }
   0xc   :  { %v148_v34 = vrot.slane %v120_v21, %v1207_v6  ;;  %v150_v35 = vcombine.high %v134_v26, %v134_v26  ;;  %v190_v36 = vrot.slane %v168_v22, %v1207_v6  ;;  %v198_v37 = vcombine.high %v176_v27, %v176_v27  ;;  %2571 = vst [vmem:[#allocation16_spill] sm:$0xff] %v1346_v18 }
   0xd   :  { %v151_v38 = vcombine.high %v141_v30, %v141_v30  ;;  %v197_v39 = vrot.slane %v169_v23, %v1207_v6  ;;  %v199_v40 = vcombine.high %v183_v32, %v183_v32  ;;  %v225_v41 = vrot.slane %v209_v16, %v1207_v6  ;;  %v1336_v16 = vld [vmem:[%s2489_s2 + $0x48] sm:$0xff] }
   0xe   :  { %v152_v42 = vcombine.high %v148_v34, %v148_v34  ;;  %v232_v43 = vrot.slane %v216_v17, %v1207_v6  ;;  %v239_v44 = vrot.slane %v217_v28, %v1207_v6  ;;  %v246_v45 = vrot.slane %v218_v29, %v1207_v6  ;;  %2569 = vst [vmem:[#allocation14_spill] sm:$0xff] %v1336_v16  ;;  %v1341_v17 = vld [vmem:[%s2489_s2 + $0x50] sm:$0xff] }
   0xf   :  { %v200_v46 = vcombine.high %v190_v36, %v190_v36  ;;  %v201_v47 = vcombine.high %v197_v39, %v197_v39  ;;  %v247_v48 = vcombine.high %v225_v41, %v225_v41  ;;  %v254_v49 = vrot.slane %v127_v19, %v1227_v24  ;;  %2570 = vst [vmem:[#allocation15_spill] sm:$0xff] %v1341_v17  ;;  %v1373_v28 = vld [vmem:[%s2489_s2 + $0x70] sm:$0xff] }
  0x10   :  { %v248_v50 = vcombine.high %v232_v43, %v232_v43  ;;  %v249_v51 = vcombine.high %v239_v44, %v239_v44  ;;  %v250_v52 = vcombine.high %v246_v45, %v246_v45  ;;  %v258_v53 = vrot.slane %v141_v30, %v1227_v24  ;;  %2574 = vst [vmem:[#allocation19_spill] sm:$0xff] %v1373_v28 }
  0x11   :  { %v262_v54 = vrot.slane %v149_v31, %v1227_v24  ;;  %v266_v55 = vrot.slane %v151_v38, %v1227_v24  ;;  %v270_v56 = vrot.slane %v134_v26, %v1227_v24  ;;  %v274_v57 = vrot.slane %v148_v34, %v1227_v24  ;;  %v1363_v26 = vld [vmem:[%s2489_s2 + $0x60] sm:$0xff]  ;;  %v1388_v34 = vld [vmem:[%s2489_s2 + $0x78] sm:$0xff] }
  0x12   :  { %v1268_v61 = vrot.slane %v150_v35, %v1227_v24  ;;  %v1271_v62 = vrot.slane %v152_v42, %v1227_v24  ;;  %v1274_v63 = vrot.slane %v176_v27, %v1227_v24  ;;  %v1277_v0 = vrot.slane %v190_v36, %v1227_v24  ;;  %2572 = vst [vmem:[#allocation17_spill] sm:$0xff] %v1363_v26  ;;  %v1368_v27 = vld [vmem:[%s2489_s2 + $0x68] sm:$0xff]  ;;  %v1393_v35 = vld [vmem:[%s2489_s2 + $0x80] sm:$0xff] }
  0x13   :  { %v1295_v4 = vrot.slane %v198_v37, %v1227_v24  ;;  %v1298_v5 = vrot.slane %v200_v46, %v1227_v24  ;;  %v1301_v7 = vrot.slane %v183_v32, %v1227_v24  ;;  %v1304_v8 = vrot.slane %v197_v39, %v1227_v24  ;;  %2573 = vst [vmem:[#allocation18_spill] sm:$0xff] %v1368_v27  ;;  %v1398_v36 = vld [vmem:[%s2489_s2 + $0x88] sm:$0xff]  ;;  %v1426_v46 = vld [vmem:[%s2489_s2 + $0x98] sm:$0xff] }
  0x14   :  { %v1322_v12 = vrot.slane %v199_v40, %v1227_v24  ;;  %v1325_v13 = vrot.slane %v201_v47, %v1227_v24  ;;  %v1328_v14 = vrot.slane %v225_v41, %v1227_v24  ;;  %v1331_v15 = vrot.slane %v239_v44, %v1227_v24  ;;  %2575 = vst [vmem:[#allocation20_spill] sm:$0xff] %v1388_v34  ;;  %v1411_v41 = vld [vmem:[%s2489_s2 + $0x90] sm:$0xff]  ;;  %v1431_v47 = vld [vmem:[%s2489_s2 + $0xa0] sm:$0xff] }
  0x15   :  { %v1349_v19 = vrot.slane %v247_v48, %v1227_v24  ;;  %v1352_v21 = vrot.slane %v249_v51, %v1227_v24  ;;  %v1355_v22 = vrot.slane %v232_v43, %v1227_v24  ;;  %v1358_v23 = vrot.slane %v246_v45, %v1227_v24  ;;  %2576 = vst [vmem:[#allocation21_spill] sm:$0xff] %v1393_v35  ;;  %v1436_v48 = vld [vmem:[%s2489_s2 + $0xa8] sm:$0xff] }
  0x16   :  { %v1376_v29 = vrot.slane %v248_v50, %v1227_v24  ;;  %v1379_v30 = vrot.slane %v250_v52, %v1227_v24  ;;  %v371_v31 = vmul.f32 %v254_v49, %v1255_v58  ;;  %v1383_v32 = vmul.f32 %v254_v49, %v1260_v59  ;;  %2577 = vst [vmem:[#allocation22_spill] sm:$0xff] %v1398_v36 }
  0x17   :  { %v1401_v37 = vmul.f32 %v254_v49, %v1265_v60  ;;  %v374_v38 = vmul.f32 %v258_v53, %v1282_v1  ;;  %v1405_v39 = vmul.f32 %v258_v53, %v1287_v2  ;;  %v377_v40 = vmul.f32 %v262_v54, %v1309_v9  ;;  %2578 = vst [vmem:[#allocation23_spill] sm:$0xff] %v1411_v41  ;;  %v1521_v9 = vld [vmem:[%s2489_s2 + $0xf8] sm:$0xff] }
  0x18   :  { %v1414_v42 = vmul.f32 %v258_v53, %v1292_v3  ;;  %v1417_v43 = vmul.f32 %v262_v54, %v1314_v10  ;;  %v1420_v44 = vmul.f32 %v262_v54, %v1319_v11  ;;  %v380_v45 = vmul.f32 %v266_v55, %v1336_v16  ;;  %2579 = vst [vmem:[#allocation24_spill] sm:$0xff] %v1426_v46  ;;  %v1451_v53 = vld [vmem:[%s2489_s2 + $0xb0] sm:$0xff]  ;;  %v1456_v54 = vld [vmem:[%s2489_s2 + $0xb8] sm:$0xff]  ;;  %v1501_v11 = vld [vmem:[%s2489_s2 + $0xe8] sm:$0xff] }
  0x19   :  { %2580 = vst [vmem:[#allocation25_spill] sm:$0xff] %v1431_v47  ;;  %2581 = vst [vmem:[#allocation26_spill] sm:$0xff] %v1436_v48  ;;  %v1439_v49 = vmul.f32 %v266_v55, %v1341_v17  ;;  %v1442_v50 = vmul.f32 %v266_v55, %v1346_v18  ;;  %v383_v51 = vmul.f32 %v270_v56, %v1363_v26  ;;  %v1461_v55 = vld [vmem:[%s2489_s2 + $0xc0] sm:$0xff]  ;;  %v1476_v17 = vld [vmem:[%s2489_s2 + $0xc8] sm:$0xff] }
  0x1a   :  { %v1446_v52 = vmul.f32 %v270_v56, %v1368_v27  ;;  %2582 = vst [vmem:[#allocation27_spill] sm:$0xff] %v1451_v53  ;;  %2583 = vst [vmem:[#allocation28_spill] sm:$0xff] %v1456_v54  ;;  %v1464_v25 = vmul.f32 %v270_v56, %v1373_v28  ;;  %v386_v27 = vmul.f32 %v274_v57, %v1388_v34  ;;  %v1481_v16 = vld [vmem:[%s2489_s2 + $0xd0] sm:$0xff]  ;;  %v1486_v56 = vld [vmem:[%s2489_s2 + $0xd8] sm:$0xff]  ;;  %v447_v34 = vsel %vm443_vm0, %v377_v40, 0.0 }
  0x1b   :  { %2584 = vst [vmem:[#allocation29_spill] sm:$0xff] %v1461_v55  ;;  %v1468_v26 = vmul.f32 %v274_v57, %v1393_v35  ;;  %v1471_v18 = vmul.f32 %v274_v57, %v1398_v36  ;;  %2585 = vst [vmem:[#allocation30_spill] sm:$0xff] %v1476_v17  ;;  %v389_v35 = vmul.f32 %v1268_v61, %v1411_v41  ;;  %v444_v57 = vsel %vm443_vm0, %v371_v31, 0.0  ;;  %v1496_v28 = vld [vmem:[%s2489_s2 + $0xe0] sm:$0xff]  ;;  %v1506_v41 = vld [vmem:[%s2489_s2 + $0xf0] sm:$0xff] }
  0x1c   :  { %2586 = vst [vmem:[#allocation31_spill] sm:$0xff] %v1481_v16  ;;  %2587 = vst [vmem:[#allocation32_spill] sm:$0xff] %v1486_v56  ;;  %v445_v36 = vsel %vm443_vm0, %v374_v38, 0.0  ;;  %v1510_v31 = vmul.f32 %v1268_v61, %v1426_v46  ;;  %v1514_v38 = vmul.f32 %v1268_v61, %v1431_v47  ;;  %v392_v40 = vmul.f32 %v1271_v62, %v1436_v48  ;;  %v1526_v3 = vld [vmem:[%s2489_s2 + $0x100] sm:$0xff]  ;;  %v1531_v46 = vld [vmem:[%s2489_s2 + $0x108] sm:$0xff] }
  0x1d   :  { %2588 = vst [vmem:[#allocation33_spill] sm:$0xff] %v1496_v28  ;;  %2589 = vst [vmem:[#allocation34_spill] sm:$0xff] %v1501_v11  ;;  %v446_v10 = vadd.f32 %v445_v36, %v444_v57  ;;  %v1535_v61 = vmul.f32 %v1271_v62, %v1451_v53  ;;  %v1539_v36 = vmul.f32 %v1271_v62, %v1456_v54  ;;  %v449_v48 = vsel %vm443_vm0, %v380_v45, 0.0  ;;  %v1547_v47 = vld [vmem:[%s2489_s2 + $0x110] sm:$0xff]  ;;  %v1552_v2 = vld [vmem:[%s2489_s2 + $0x118] sm:$0xff] }
  0x1e   :  { %2590 = vst [vmem:[#allocation35_spill] sm:$0xff] %v1506_v41  ;;  %2591 = vst [vmem:[#allocation36_spill] sm:$0xff] %v1521_v9  ;;  %v395_v57 = vmul.f32 %v1274_v63, %v1461_v55  ;;  %v1557_v62 = vld [vmem:[%s2489_s2 + $0x120] sm:$0xff]  ;;  %v1561_v55 = vmul.f32 %v1274_v63, %v1476_v17  ;;  %v1565_v45 = vmul.f32 %v1274_v63, %v1481_v16  ;;  %v451_v59 = vsel %vm443_vm0, %v383_v51, 0.0  ;;  %v1585_v63 = vld [vmem:[%s2489_s2 + $0x128] sm:$0xff] }
  0x1f   :  { %2592 = vst [vmem:[#allocation37_spill] sm:$0xff] %v1526_v3  ;;  %2593 = vst [vmem:[#allocation38_spill] sm:$0xff] %v1531_v46  ;;  %v398_v54 = vmul.f32 %v1277_v0, %v1486_v56  ;;  %v448_v53 = vadd.f32 %v447_v34, %v446_v10  ;;  %v1571_v1 = vmul.f32 %v1277_v0, %v1496_v28  ;;  %v1590_v10 = vld [vmem:[%s2489_s2 + $0x130] sm:$0xff]  ;;  %v1612_v28 = vld [vmem:[%s2489_s2 + $0x140] sm:$0xff] }
  0x20   :  { %2594 = vst [vmem:[#allocation39_spill] sm:$0xff] %v1547_v47  ;;  %2595 = vst [vmem:[#allocation40_spill] sm:$0xff] %v1552_v2  ;;  %v1575_v60 = vmul.f32 %v1277_v0, %v1501_v11  ;;  %v1579_v17 = vmul.f32 %v1295_v4, %v1506_v41  ;;  %v1594_v0 = vmul.f32 %v1295_v4, %v1521_v9  ;;  %v1607_v11 = vld [vmem:[%s2489_s2 + $0x138] sm:$0xff]  ;;  %v1651_v56 = vld [vmem:[%s2489_s2 + $0x160] sm:$0xff] }
  0x21   :  { %2596 = vst [vmem:[#allocation41_spill] sm:$0xff] %v1557_v62  ;;  %2597 = vst [vmem:[#allocation42_spill] sm:$0xff] %v1585_v63  ;;  %v1598_v34 = vmul.f32 %v1295_v4, %v1526_v3  ;;  %v1602_v51 = vmul.f32 %v1298_v5, %v1531_v46  ;;  %v450_v41 = vadd.f32 %v449_v48, %v448_v53  ;;  %v453_v53 = vsel %vm443_vm0, %v386_v27, 0.0  ;;  %v1630_v46 = vld [vmem:[%s2489_s2 + $0x148] sm:$0xff]  ;;  %v1670_v16 = vld [vmem:[%s2489_s2 + $0x170] sm:$0xff] }
  0x22   :  { %2598 = vst [vmem:[#allocation43_spill] sm:$0xff] %v1590_v10  ;;  %2599 = vst [vmem:[#allocation44_spill] sm:$0xff] %v1607_v11  ;;  %v1616_v9 = vmul.f32 %v1298_v5, %v1547_v47  ;;  %v1620_v4 = vmul.f32 %v1298_v5, %v1552_v2  ;;  %v1624_v48 = vmul.f32 %v1301_v7, %v1557_v62  ;;  %v1635_v47 = vld [vmem:[%s2489_s2 + $0x150] sm:$0xff]  ;;  %v491_v5 = vsel %vm443_vm0, %v1383_v32, 0.0  ;;  %v1646_v2 = vld [vmem:[%s2489_s2 + $0x158] sm:$0xff] }
  0x23   :  { %2600 = vst [vmem:[#allocation45_spill] sm:$0xff] %v1612_v28  ;;  %2601 = vst [vmem:[#allocation46_spill] sm:$0xff] %v1630_v46  ;;  %v452_v3 = vadd.f32 %v451_v59, %v450_v41  ;;  %v492_v62 = vsel %vm443_vm0, %v1405_v39, 0.0  ;;  %v494_v27 = vsel %vm443_vm0, %v1417_v43, 0.0  ;;  %v1655_v59 = vmul.f32 %v1301_v7, %v1585_v63  ;;  %v1665_v43 = vld [vmem:[%s2489_s2 + $0x168] sm:$0xff] }
  0x24   :  { %2602 = vst [vmem:[#allocation47_spill] sm:$0xff] %v1635_v47  ;;  %2603 = vst [vmem:[#allocation48_spill] sm:$0xff] %v1646_v2  ;;  %v1659_v32 = vmul.f32 %v1301_v7, %v1590_v10  ;;  %v455_v39 = vsel %vm443_vm0, %v389_v35, 0.0  ;;  %v493_v41 = vadd.f32 %v492_v62, %v491_v5  ;;  %v1674_v63 = vmul.f32 %v1304_v8, %v1607_v11  ;;  %v1685_v5 = vld [vmem:[%s2489_s2 + $0x178] sm:$0xff]  ;;  %v1690_v10 = vld [vmem:[%s2489_s2 + $0x180] sm:$0xff] }
  0x25   :  { %2604 = vst [vmem:[#allocation49_spill] sm:$0xff] %v1670_v16  ;;  %v1678_v7 = vmul.f32 %v1304_v8, %v1612_v28  ;;  %v454_v35 = vadd.f32 %v453_v53, %v452_v3  ;;  %v496_v62 = vsel %vm443_vm0, %v1439_v49, 0.0  ;;  %2605 = vst [vmem:[#allocation50_spill] sm:$0xff] %v1685_v5  ;;  %v1694_v11 = vmul.f32 %v1304_v8, %v1630_v46  ;;  %v1704_v28 = vld [vmem:[%s2489_s2 + $0x188] sm:$0xff] }
  0x26   :  { %2606 = vst [vmem:[#allocation51_spill] sm:$0xff] %v1690_v10  ;;  %v1698_v3 = vmul.f32 %v1322_v12, %v1635_v47  ;;  %v457_v49 = vsel %vm443_vm0, %v392_v40, 0.0  ;;  %v495_v53 = vadd.f32 %v494_v27, %v493_v41  ;;  %2607 = vst [vmem:[#allocation52_spill] sm:$0xff] %v1704_v28  ;;  %v1708_v58 = vmul.f32 %v1322_v12, %v1646_v2 }
  0x27   :  { %v1712_v8 = vmul.f32 %v1322_v12, %v1651_v56  ;;  %v456_v46 = vadd.f32 %v455_v39, %v454_v35  ;;  %v498_v47 = vsel %vm443_vm0, %v1446_v52, 0.0  ;;  %v1718_v40 = vmul.f32 %v1325_v13, %v1665_v43  ;;  %v1728_v12 = vld [vmem:[%s2489_s2 + $0x190] sm:$0xff] }
  0x28   :  { %v1722_v27 = vmul.f32 %v1325_v13, %v1670_v16  ;;  %v459_v41 = vsel %vm443_vm0, %v395_v57, 0.0  ;;  %v497_v2 = vadd.f32 %v496_v62, %v495_v53  ;;  %v1732_v39 = vmul.f32 %v1325_v13, %v1685_v5  ;;  %v1743_v57 = vld [vmem:[%s2489_s2 + $0x198] sm:$0xff] }
  0x29   :  { %v1736_v52 = vmul.f32 %v1328_v14, %v1690_v10  ;;  %v458_v35 = vadd.f32 %v457_v49, %v456_v46  ;;  %v500_v16 = vsel %vm443_vm0, %v1468_v26, 0.0  ;;  %v1747_v62 = vmul.f32 %v1328_v14, %v1704_v28  ;;  %v1755_v46 = vld [vmem:[%s2489_s2 + $0x1a0] sm:$0xff] }
  0x2a   :  { %v461_v13 = vsel %vm443_vm0, %v398_v54, 0.0  ;;  %v499_v53 = vadd.f32 %v498_v47, %v497_v2  ;;  %v502_v10 = vsel %vm443_vm0, %v1510_v31, 0.0  ;;  %2608 = vst [vmem:[#allocation53_spill] sm:$0xff] %v1755_v46  ;;  %v538_v49 = vsel %vm443_vm0, %v1401_v37, 0.0  ;;  %v1766_v2 = vld [vmem:[%s2489_s2 + $0x1a8] sm:$0xff] }
  0x2b   :  { %v460_v26 = vadd.f32 %v459_v41, %v458_v35  ;;  %v539_v5 = vsel %vm443_vm0, %v1414_v42, 0.0  ;;  %v541_v28 = vsel %vm443_vm0, %v1420_v44, 0.0  ;;  %v1770_v47 = vmul.f32 %v1328_v14, %v1728_v12  ;;  %v1777_v42 = vld [vmem:[%s2489_s2 + $0x1b0] sm:$0xff] }
  0x2c   :  { %v463_v54 = vsel %vm443_vm0, %v1579_v17, 0.0  ;;  %v501_v31 = vadd.f32 %v500_v16, %v499_v53  ;;  %v540_v37 = vadd.f32 %v539_v5, %v538_v49  ;;  %v1781_v44 = vmul.f32 %v1331_v15, %v1743_v57  ;;  %v1790_v16 = vld [vmem:[%s2489_s2 + $0x1b8] sm:$0xff] }
  0x2d   :  { %v462_v41 = vadd.f32 %v461_v13, %v460_v26  ;;  %v504_v35 = vsel %vm443_vm0, %v1535_v61, 0.0  ;;  %v543_v14 = vsel %vm443_vm0, %v1442_v50, 0.0  ;;  %v1794_v17 = vmul.f32 %v1331_v15, %v1755_v46  ;;  %v1801_v61 = vld [vmem:[%s2489_s2 + $0x1c0] sm:$0xff] }
  0x2e   :  { %v465_v5 = vsel %vm443_vm0, %v1602_v51, 0.0  ;;  %v503_v53 = vadd.f32 %v502_v10, %v501_v31  ;;  %v542_v13 = vadd.f32 %v541_v28, %v540_v37  ;;  %v1805_v50 = vmul.f32 %v1331_v15, %v1766_v2  ;;  %v1814_v28 = vld [vmem:[%s2489_s2 + $0x1c8] sm:$0xff] }
  0x2f   :  { %v464_v26 = vadd.f32 %v463_v54, %v462_v41  ;;  %v506_v49 = vsel %vm443_vm0, %v1561_v55, 0.0  ;;  %v545_v46 = vsel %vm443_vm0, %v1464_v25, 0.0  ;;  %v1818_v10 = vmul.f32 %v1349_v19, %v1777_v42  ;;  %v1825_v55 = vld [vmem:[%s2489_s2 + $0x1d0] sm:$0xff] }
  0x30   :  { %v467_v15 = vsel %vm443_vm0, %v1624_v48, 0.0  ;;  %v505_v51 = vadd.f32 %v504_v35, %v503_v53  ;;  %v544_v54 = vadd.f32 %v543_v14, %v542_v13  ;;  %2609 = vst [vmem:[#allocation54_spill] sm:$0xff] %v1825_v55  ;;  %v1829_v25 = vmul.f32 %v1349_v19, %v1790_v16  ;;  %v1838_v48 = vld [vmem:[%s2489_s2 + $0x1d8] sm:$0xff] }
  0x31   :  { %v466_v31 = vadd.f32 %v465_v5, %v464_v26  ;;  %v508_v37 = vsel %vm443_vm0, %v1571_v1, 0.0  ;;  %v547_v41 = vsel %vm443_vm0, %v1471_v18, 0.0  ;;  %2610 = vst [vmem:[#allocation55_spill] sm:$0xff] %v1838_v48  ;;  %v1842_v35 = vmul.f32 %v1349_v19, %v1801_v61  ;;  %v1849_v1 = vld [vmem:[%s2489_s2 + $0x1e0] sm:$0xff] }
  0x32   :  { %v469_v14 = vsel %vm443_vm0, %v1674_v63, 0.0  ;;  %v507_v53 = vadd.f32 %v506_v49, %v505_v51  ;;  %v546_v5 = vadd.f32 %v545_v46, %v544_v54  ;;  %2611 = vst [vmem:[#allocation56_spill] sm:$0xff] %v1849_v1  ;;  %v1853_v18 = vmul.f32 %v1352_v21, %v1814_v28  ;;  %v1862_v63 = vld [vmem:[%s2489_s2 + $0x1e8] sm:$0xff] }
  0x33   :  { %v468_v13 = vadd.f32 %v467_v15, %v466_v31  ;;  %v510_v26 = vsel %vm443_vm0, %v1594_v0, 0.0  ;;  %v549_v19 = vsel %vm443_vm0, %v1514_v38, 0.0  ;;  %2612 = vst [vmem:[#allocation57_spill] sm:$0xff] %v1862_v63  ;;  %v1866_v46 = vmul.f32 %v1352_v21, %v1825_v55  ;;  %v1873_v0 = vld [vmem:[%s2489_s2 + $0x1f0] sm:$0xff] }
  0x34   :  { %v471_v49 = vsel %vm443_vm0, %v1698_v3, 0.0  ;;  %v509_v51 = vadd.f32 %v508_v37, %v507_v53  ;;  %v548_v15 = vadd.f32 %v547_v41, %v546_v5  ;;  %2613 = vst [vmem:[#allocation58_spill] sm:$0xff] %v1873_v0  ;;  %v1877_v38 = vmul.f32 %v1352_v21, %v1838_v48  ;;  %v1886_v3 = vld [vmem:[%s2489_s2 + $0x1f8] sm:$0xff] }
  0x35   :  { %v470_v54 = vadd.f32 %v469_v14, %v468_v13  ;;  %v512_v31 = vsel %vm443_vm0, %v1616_v9, 0.0  ;;  %v551_v55 = vsel %vm443_vm0, %v1539_v36, 0.0  ;;  %2614 = vst [vmem:[#allocation59_spill] sm:$0xff] %v1886_v3  ;;  %v431_v37 = vmul.f32 %v1355_v22, %v1849_v1  ;;  %v1895_v9 = vld [vmem:[%s2489_s2 + $0x200] sm:$0xff]  ;;  %v1900_v36 = vld [vmem:[%s2489_s2 + $0x208] sm:$0xff] }
  0x36   :  { %v473_v41 = vsel %vm443_vm0, %v1718_v40, 0.0  ;;  %v511_v21 = vadd.f32 %v510_v26, %v509_v51  ;;  %v550_v53 = vadd.f32 %v549_v19, %v548_v15  ;;  %2615 = vst [vmem:[#allocation60_spill] sm:$0xff] %v1895_v9  ;;  %2616 = vst [vmem:[#allocation61_spill] sm:$0xff] %v1900_v36  ;;  %v432_v14 = vmul.f32 %v1355_v22, %v1862_v63  ;;  %v1911_v26 = vld [vmem:[%s2489_s2 + $0x210] sm:$0xff] }
  0x37   :  { %v472_v5 = vadd.f32 %v471_v49, %v470_v54  ;;  %v514_v13 = vsel %vm443_vm0, %v1655_v59, 0.0  ;;  %v553_v40 = vsel %vm443_vm0, %v1565_v45, 0.0  ;;  %2617 = vst [vmem:[#allocation62_spill] sm:$0xff] %v1911_v26  ;;  %v1915_v19 = vmul.f32 %v1355_v22, %v1873_v0  ;;  %v1922_v59 = vld [vmem:[%s2489_s2 + $0x218] sm:$0xff] }
  0x38   :  { %v475_v51 = vsel %vm443_vm0, %v1736_v52, 0.0  ;;  %v513_v15 = vadd.f32 %v512_v31, %v511_v21  ;;  %v552_v49 = vadd.f32 %v551_v55, %v550_v53  ;;  %2618 = vst [vmem:[#allocation63_spill] sm:$0xff] %v1922_v59  ;;  %v434_v45 = vmul.f32 %v1358_v23, %v1886_v3  ;;  %v1933_v52 = vld [vmem:[%s2489_s2 + $0x220] sm:$0xff]  ;;  %v1938_v55 = vld [vmem:[%s2489_s2 + $0x228] sm:$0xff]  ;;  %v1954_v53 = vld [vmem:[%s2489_s2 + $0x238] sm:$0xff] }
  0x39   :  { %v474_v54 = vadd.f32 %v473_v41, %v472_v5  ;;  %v516_v63 = vsel %vm443_vm0, %v1678_v7, 0.0  ;;  %v555_v22 = vsel %vm443_vm0, %v1575_v60, 0.0  ;;  %2619 = vst [vmem:[#allocation64_spill] sm:$0xff] %v1933_v52  ;;  %2620 = vst [vmem:[#allocation65_spill] sm:$0xff] %v1938_v55  ;;  %v435_v31 = vmul.f32 %v1358_v23, %v1895_v9  ;;  %v1949_v60 = vld [vmem:[%s2489_s2 + $0x230] sm:$0xff] }
  0x3a   :  { %v1944_v41 = vmul.f32 %v1358_v23, %v1900_v36  ;;  %v515_v7 = vadd.f32 %v514_v13, %v513_v15  ;;  %v554_v21 = vadd.f32 %v553_v40, %v552_v49  ;;  %2621 = vst [vmem:[#allocation66_spill] sm:$0xff] %v1949_v60  ;;  %2622 = vst [vmem:[#allocation67_spill] sm:$0xff] %v1954_v53  ;;  %v518_v23 = vsel %vm443_vm0, %v1708_v58, 0.0 }
  0x3b   :  { %v437_v5 = vmul.f32 %v1376_v29, %v1911_v26  ;;  %v476_v0 = vadd.f32 %v475_v51, %v474_v54  ;;  %v557_v13 = vsel %vm443_vm0, %v1598_v34, 0.0  ;;  %v438_v40 = vmul.f32 %v1376_v29, %v1922_v59  ;;  %v2650_v26 = vld [vmem:[#allocation25_spill] sm:$0xff] }
  0x3c   :  { %v477_v15 = vsel %vm443_vm0, %v1781_v44, 0.0  ;;  %v517_v49 = vadd.f32 %v516_v63, %v515_v7  ;;  %v556_v36 = vadd.f32 %v555_v22, %v554_v21  ;;  %v439_v9 = vmul.f32 %v1376_v29, %v1933_v52 }
  0x3d   :  { %v440_v51 = vmul.f32 %v1379_v30, %v1938_v55  ;;  %v520_v58 = vsel %vm443_vm0, %v1722_v27, 0.0  ;;  %v559_v34 = vsel %vm443_vm0, %v1620_v4, 0.0  ;;  %v441_v54 = vmul.f32 %v1379_v30, %v1949_v60 }
  0x3e   :  { %v442_v44 = vmul.f32 %v1379_v30, %v1954_v53  ;;  %v519_v63 = vadd.f32 %v518_v23, %v517_v49  ;;  %v558_v22 = vadd.f32 %v557_v13, %v556_v36  ;;  %v478_v7 = vadd.f32 %v477_v15, %v476_v0  ;;  %v1145_v30 = vld [vmem:[%s2487_s0 + $0x20] sm:$0xff] }
  0x3f   :  { %v479_v29 = vsel %vm443_vm0, %v1818_v10, 0.0  ;;  %v522_v21 = vsel %vm443_vm0, %v1747_v62, 0.0  ;;  %v561_v27 = vsel %vm443_vm0, %v1659_v32, 0.0  ;;  %v481_v4 = vsel %vm443_vm0, %v1853_v18, 0.0 }
  0x40   :  { %v483_v52 = vsel %vm443_vm0, %v431_v37, 0.0  ;;  %v521_v60 = vadd.f32 %v520_v58, %v519_v63  ;;  %v560_v59 = vadd.f32 %v559_v34, %v558_v22  ;;  %v485_v0 = vsel %vm443_vm0, %v434_v45, 0.0 }
  0x41   :  { %v1992_v10 = vsel %vm443_vm0, %v437_v5, 0.0  ;;  %v1995_v62 = vsel %vm443_vm0, %v440_v51, 0.0  ;;  %v563_v32 = vsel %vm443_vm0, %v1694_v11, 0.0  ;;  %v524_v37 = vsel %vm443_vm0, %v1794_v17, 0.0 }
  0x42   :  { %v523_v18 = vadd.f32 %v522_v21, %v521_v60  ;;  %v562_v36 = vadd.f32 %v561_v27, %v560_v59  ;;  %v637_v23 = vcombine.high %v1145_v30, %v1145_v30  ;;  %v480_v13 = vadd.f32 %v479_v29, %v478_v7 }
  0x43   :  { %v526_v15 = vsel %vm443_vm0, %v1829_v25, 0.0  ;;  %v528_v45 = vsel %vm443_vm0, %v1866_v46, 0.0  ;;  %v565_v5 = vsel %vm443_vm0, %v1712_v8, 0.0  ;;  %v530_v49 = vsel %vm443_vm0, %v432_v14, 0.0  ;;  %v1146_v25 = vld [vmem:[%s2487_s0 + $0x28] sm:$0xff] }
  0x44   :  { %v2009_v11 = vsel %vm443_vm0, %v435_v31, 0.0  ;;  %v564_v60 = vadd.f32 %v563_v32, %v562_v36  ;;  %v2623_v17 = vcombine.high %v1225_v20, %v1225_v20  ;;  %v525_v51 = vadd.f32 %v524_v37, %v523_v18 }
  0x45   :  { %v2019_v46 = vsel %vm443_vm0, %v438_v40, 0.0  ;;  %v2022_v8 = vsel %vm443_vm0, %v441_v54, 0.0  ;;  %v567_v14 = vsel %vm443_vm0, %v1732_v39, 0.0  ;;  %v644_v58 = vrot.slane %v1145_v30, %v1207_v6 }
  0x46   :  { %v602_v59 = vrot.slane %v2623_v17, %v1207_v6  ;;  %v566_v31 = vadd.f32 %v565_v5, %v564_v60  ;;  %v651_v20 = vrot.slane %v637_v23, %v1207_v6  ;;  %v686_v34 = vcombine.high %v1146_v25, %v1146_v25 }
  0x47   :  { %v482_v63 = vadd.f32 %v481_v4, %v480_v13  ;;  %v569_v22 = vsel %vm443_vm0, %v1770_v47, 0.0  ;;  %v571_v40 = vsel %vm443_vm0, %v1805_v50, 0.0  ;;  %v573_v54 = vsel %vm443_vm0, %v1842_v35, 0.0 }
  0x48   :  { %v568_v7 = vadd.f32 %v567_v14, %v566_v31  ;;  %v603_v39 = vcombine.high %v1237_v33, %v1237_v33  ;;  %v604_v29 = vcombine.high %v602_v59, %v602_v59  ;;  %v611_v21 = vrot.slane %v1237_v33, %v1207_v6 }
  0x49   :  { %v527_v27 = vadd.f32 %v526_v15, %v525_v51  ;;  %v575_v4 = vsel %vm443_vm0, %v1877_v38, 0.0  ;;  %v2042_v47 = vsel %vm443_vm0, %v1915_v19, 0.0  ;;  %v2046_v50 = vsel %vm443_vm0, %v1944_v41, 0.0 }
  0x4a   :  { %v652_v35 = vcombine.high %v644_v58, %v644_v58  ;;  %v653_v30 = vcombine.high %v651_v20, %v651_v20  ;;  %v693_v32 = vrot.slane %v1146_v25, %v1207_v6  ;;  %v700_v18 = vrot.slane %v686_v34, %v1207_v6 }
  0x4b   :  { %v484_v37 = vadd.f32 %v483_v52, %v482_v63  ;;  %v2051_v33 = vsel %vm443_vm0, %v439_v9, 0.0  ;;  %v2054_v38 = vsel %vm443_vm0, %v442_v44, 0.0  ;;  %v618_v19 = vrot.slane %v602_v59, %v1207_v6 }
  0x4c   :  { %v570_v36 = vadd.f32 %v569_v22, %v568_v7  ;;  %v625_v23 = vrot.slane %v603_v39, %v1207_v6  ;;  %v632_v41 = vrot.slane %v604_v29, %v1207_v6  ;;  %v633_v13 = vcombine.high %v611_v21, %v611_v21 }
  0x4d   :  { %v529_v15 = vadd.f32 %v528_v45, %v527_v27  ;;  %v634_v5 = vcombine.high %v618_v19, %v618_v19  ;;  %v660_v60 = vrot.slane %v644_v58, %v1207_v6  ;;  %v667_v52 = vrot.slane %v651_v20, %v1207_v6 }
  0x4e   :  { %v674_v9 = vrot.slane %v652_v35, %v1207_v6  ;;  %v681_v17 = vrot.slane %v653_v30, %v1207_v6  ;;  %v701_v44 = vcombine.high %v693_v32, %v693_v32  ;;  %v702_v25 = vcombine.high %v700_v18, %v700_v18 }
  0x4f   :  { %v486_v51 = vadd.f32 %v485_v0, %v484_v37  ;;  %v635_v59 = vcombine.high %v625_v23, %v625_v23  ;;  %v636_v14 = vcombine.high %v632_v41, %v632_v41  ;;  %v682_v31 = vcombine.high %v660_v60, %v660_v60 }
  0x50   :  { %v572_v34 = vadd.f32 %v571_v40, %v570_v36  ;;  %v683_v63 = vcombine.high %v667_v52, %v667_v52  ;;  %v684_v22 = vcombine.high %v674_v9, %v674_v9  ;;  %v685_v7 = vcombine.high %v681_v17, %v681_v17 }
  0x51   :  { %v531_v45 = vadd.f32 %v530_v49, %v529_v15  ;;  %v709_v39 = vrot.slane %v693_v32, %v1207_v6  ;;  %v716_v58 = vrot.slane %v700_v18, %v1207_v6  ;;  %v738_v20 = vrot.slane %v611_v21, %v1227_v24 }
  0x52   :  { %v723_v29 = vrot.slane %v701_v44, %v1207_v6  ;;  %v730_v27 = vrot.slane %v702_v25, %v1207_v6  ;;  %v742_v0 = vrot.slane %v625_v23, %v1227_v24  ;;  %v746_v35 = vrot.slane %v633_v13, %v1227_v24 }
  0x53   :  { %v488_v40 = vadd.f32 %v1992_v10, %v486_v51  ;;  %v731_v30 = vcombine.high %v709_v39, %v709_v39  ;;  %v732_v37 = vcombine.high %v716_v58, %v716_v58  ;;  %v750_v49 = vrot.slane %v635_v59, %v1227_v24 }
  0x54   :  { %v574_v36 = vadd.f32 %v573_v54, %v572_v34  ;;  %v733_v32 = vcombine.high %v723_v29, %v723_v29  ;;  %v734_v15 = vcombine.high %v730_v27, %v730_v27  ;;  %v754_v18 = vrot.slane %v618_v19, %v1227_v24 }
  0x55   :  { %v533_v21 = vadd.f32 %v2009_v11, %v531_v45  ;;  %v758_v44 = vrot.slane %v632_v41, %v1227_v24  ;;  %v762_v6 = vrot.slane %v634_v5, %v1227_v24  ;;  %v766_v23 = vrot.slane %v636_v14, %v1227_v24  ;;  %v2631_v45 = vld [vmem:[#allocation7_spill] sm:$0xff] }
  0x56   :  { %v770_v13 = vrot.slane %v660_v60, %v1227_v24  ;;  %v774_v10 = vrot.slane %v674_v9, %v1227_v24  ;;  %v778_v25 = vrot.slane %v682_v31, %v1227_v24  ;;  %v782_v54 = vrot.slane %v684_v22, %v1227_v24  ;;  %v2630_v22 = vld [vmem:[#allocation6_spill] sm:$0xff] }
  0x57   :  { %v2082_v51 = vadd.f32 %v1995_v62, %v488_v40  ;;  %v2085_v19 = vrot.slane %v667_v52, %v1227_v24  ;;  %v2088_v11 = vrot.slane %v681_v17, %v1227_v24  ;;  %v2091_v41 = vrot.slane %v683_v63, %v1227_v24  ;;  %v2629_v63 = vld [vmem:[#allocation5_spill] sm:$0xff] }
  0x58   :  { %v576_v5 = vadd.f32 %v575_v4, %v574_v36  ;;  %v2094_v60 = vrot.slane %v685_v7, %v1227_v24  ;;  %v2097_v9 = vrot.slane %v709_v39, %v1227_v24  ;;  %v2100_v59 = vrot.slane %v723_v29, %v1227_v24  ;;  %v2632_v29 = vld [vmem:[#allocation8_spill] sm:$0xff]  ;;  %v2634_v36 = vld [vmem:[#allocation10_spill] sm:$0xff] }
  0x59   :  { %2624 = vst [vmem:[#allocation68_spill] sm:$0xff] %v2082_v51  ;;  %v535_v62 = vadd.f32 %v2019_v46, %v533_v21  ;;  %v2104_v52 = vrot.slane %v731_v30, %v1227_v24  ;;  %v2107_v17 = vrot.slane %v733_v32, %v1227_v24  ;;  %v2110_v14 = vrot.slane %v716_v58, %v1227_v24  ;;  %v2633_v58 = vld [vmem:[#allocation9_spill] sm:$0xff] }
  0x5a   :  { %v2113_v4 = vrot.slane %v730_v27, %v1227_v24  ;;  %v2116_v31 = vrot.slane %v732_v37, %v1227_v24  ;;  %v2119_v34 = vrot.slane %v734_v15, %v1227_v24  ;;  %v855_v46 = vmul.f32 %v738_v20, %v2629_v63  ;;  %v2635_v37 = vld [vmem:[#allocation11_spill] sm:$0xff]  ;;  %v2636_v24 = vld [vmem:[#allocation12_spill] sm:$0xff] }
  0x5b   :  { %2625 = vst [vmem:[#allocation69_spill] sm:$0xff] %v2110_v14  ;;  %v856_v7 = vmul.f32 %v738_v20, %v2630_v22  ;;  %v2124_v39 = vmul.f32 %v738_v20, %v2631_v45  ;;  %v858_v40 = vmul.f32 %v742_v0, %v2632_v29  ;;  %v859_v30 = vmul.f32 %v742_v0, %v2633_v58  ;;  %v2638_v22 = vld [vmem:[#allocation13_spill] sm:$0xff]  ;;  %v2639_v20 = vld [vmem:[#allocation14_spill] sm:$0xff]  ;;  %v2640_v29 = vld [vmem:[#allocation15_spill] sm:$0xff] }
  0x5c   :  { %2626 = vst [vmem:[#allocation70_spill] sm:$0xff] %v2113_v4  ;;  %2627 = vst [vmem:[#allocation71_spill] sm:$0xff] %v2116_v31  ;;  %v578_v27 = vadd.f32 %v2042_v47, %v576_v5  ;;  %v2130_v32 = vmul.f32 %v742_v0, %v2634_v36  ;;  %v861_v21 = vmul.f32 %v746_v35, %v2635_v37  ;;  %v2641_v58 = vld [vmem:[#allocation16_spill] sm:$0xff]  ;;  %v2642_v47 = vld [vmem:[#allocation17_spill] sm:$0xff] }
  0x5d   :  { %2628 = vst [vmem:[#allocation72_spill] sm:$0xff] %v2119_v34  ;;  %v862_v15 = vmul.f32 %v746_v35, %v2636_v24  ;;  %v2135_v63 = vadd.f32 %v2022_v8, %v535_v62  ;;  %v2138_v53 = vmul.f32 %v746_v35, %v2638_v22  ;;  %v864_v45 = vmul.f32 %v750_v49, %v2639_v20  ;;  %v2643_v5 = vld [vmem:[#allocation18_spill] sm:$0xff]  ;;  %v2644_v37 = vld [vmem:[#allocation19_spill] sm:$0xff]  ;;  %v2645_v24 = vld [vmem:[#allocation20_spill] sm:$0xff] }
  0x5e   :  { %v865_v51 = vmul.f32 %v750_v49, %v2640_v29  ;;  %v2143_v34 = vmul.f32 %v750_v49, %v2641_v58  ;;  %v867_v0 = vmul.f32 %v754_v18, %v2642_v47  ;;  %v868_v36 = vmul.f32 %v754_v18, %v2643_v5  ;;  %v2646_v62 = vld [vmem:[#allocation21_spill] sm:$0xff]  ;;  %v2647_v35 = vld [vmem:[#allocation22_spill] sm:$0xff]  ;;  %v2648_v20 = vld [vmem:[#allocation23_spill] sm:$0xff] }
  0x5f   :  { %2637 = vst [vmem:[#allocation5_spill] sm:$0xff] %v2135_v63  ;;  %v2148_v55 = vmul.f32 %v754_v18, %v2644_v37  ;;  %v870_v8 = vmul.f32 %v758_v44, %v2645_v24  ;;  %v871_v63 = vmul.f32 %v758_v44, %v2646_v62  ;;  %v2153_v22 = vmul.f32 %v758_v44, %v2647_v35  ;;  %v2649_v49 = vld [vmem:[#allocation24_spill] sm:$0xff]  ;;  %v2651_v18 = vld [vmem:[#allocation26_spill] sm:$0xff]  ;;  %v2652_v4 = vld [vmem:[#allocation27_spill] sm:$0xff] }
  0x60   :  { %v873_v31 = vmul.f32 %v762_v6, %v2648_v20  ;;  %v580_v29 = vadd.f32 %v2046_v50, %v578_v27  ;;  %v874_v58 = vmul.f32 %v762_v6, %v2649_v49  ;;  %v2159_v47 = vmul.f32 %v762_v6, %v2650_v26  ;;  %v2653_v35 = vld [vmem:[#allocation28_spill] sm:$0xff]  ;;  %v2655_v50 = vld [vmem:[#allocation29_spill] sm:$0xff]  ;;  %v2656_v49 = vld [vmem:[#allocation30_spill] sm:$0xff] }
  0x61   :  { %v927_v5 = vsel %vm443_vm0, %v855_v46, 0.0  ;;  %v876_v37 = vmul.f32 %v766_v23, %v2651_v18  ;;  %v2164_v24 = vmul.f32 %v766_v23, %v2652_v4  ;;  %v928_v62 = vsel %vm443_vm0, %v858_v40, 0.0  ;;  %v2657_v6 = vld [vmem:[#allocation31_spill] sm:$0xff]  ;;  %v2659_v18 = vld [vmem:[#allocation32_spill] sm:$0xff]  ;;  %v2660_v4 = vld [vmem:[#allocation33_spill] sm:$0xff] }
  0x62   :  { %v930_v44 = vsel %vm443_vm0, %v861_v21, 0.0  ;;  %v2169_v20 = vmul.f32 %v766_v23, %v2653_v35  ;;  %v879_v27 = vmul.f32 %v770_v13, %v2655_v50  ;;  %v2173_v3 = vmul.f32 %v770_v13, %v2656_v49  ;;  %v2661_v23 = vld [vmem:[#allocation34_spill] sm:$0xff]  ;;  %v2662_v50 = vld [vmem:[#allocation35_spill] sm:$0xff] }
  0x63   :  { %v929_v26 = vadd.f32 %v928_v62, %v927_v5  ;;  %v2176_v46 = vmul.f32 %v770_v13, %v2657_v6  ;;  %v882_v14 = vmul.f32 %v774_v10, %v2659_v18  ;;  %v2180_v1 = vmul.f32 %v774_v10, %v2660_v4  ;;  %v2664_v13 = vld [vmem:[#allocation37_spill] sm:$0xff]  ;;  %v2665_v6 = vld [vmem:[#allocation38_spill] sm:$0xff] }
  0x64   :  { %2654 = vst [vmem:[#allocation6_spill] sm:$0xff] %v2169_v20  ;;  %v932_v40 = vsel %vm443_vm0, %v864_v45, 0.0  ;;  %v582_v21 = vadd.f32 %v2051_v33, %v580_v29  ;;  %v2185_v35 = vmul.f32 %v774_v10, %v2661_v23  ;;  %v885_v48 = vmul.f32 %v778_v25, %v2662_v50  ;;  %v2663_v20 = vld [vmem:[#allocation36_spill] sm:$0xff]  ;;  %v2668_v10 = vld [vmem:[#allocation41_spill] sm:$0xff] }
  0x65   :  { %2658 = vst [vmem:[#allocation7_spill] sm:$0xff] %v2176_v46  ;;  %v931_v49 = vadd.f32 %v930_v44, %v929_v26  ;;  %v2189_v5 = vmul.f32 %v778_v25, %v2663_v20  ;;  %v2192_v62 = vmul.f32 %v778_v25, %v2664_v13  ;;  %v888_v18 = vmul.f32 %v782_v54, %v2665_v6  ;;  %v2666_v46 = vld [vmem:[#allocation39_spill] sm:$0xff]  ;;  %v2667_v33 = vld [vmem:[#allocation40_spill] sm:$0xff]  ;;  %v2669_v26 = vld [vmem:[#allocation42_spill] sm:$0xff] }
  0x66   :  { %v934_v4 = vsel %vm443_vm0, %v867_v0, 0.0  ;;  %v2197_v45 = vmul.f32 %v782_v54, %v2666_v46  ;;  %v2200_v29 = vmul.f32 %v782_v54, %v2667_v33  ;;  %v891_v23 = vmul.f32 %v2085_v19, %v2668_v10  ;;  %v2670_v33 = vld [vmem:[#allocation43_spill] sm:$0xff] }
  0x67   :  { %v933_v44 = vadd.f32 %v932_v40, %v931_v49  ;;  %v2206_v20 = vmul.f32 %v2085_v19, %v2669_v26  ;;  %v936_v25 = vsel %vm443_vm0, %v870_v8, 0.0  ;;  %v974_v50 = vsel %vm443_vm0, %v856_v7, 0.0  ;;  %v2671_v49 = vld [vmem:[#allocation44_spill] sm:$0xff]  ;;  %v2672_v26 = vld [vmem:[#allocation45_spill] sm:$0xff] }
  0x68   :  { %v975_v0 = vsel %vm443_vm0, %v859_v30, 0.0  ;;  %v2212_v46 = vadd.f32 %v2054_v38, %v582_v21  ;;  %v977_v6 = vsel %vm443_vm0, %v862_v15, 0.0  ;;  %v2217_v40 = vmul.f32 %v2085_v19, %v2670_v33  ;;  %v2673_v38 = vld [vmem:[#allocation46_spill] sm:$0xff] }
  0x69   :  { %v935_v13 = vadd.f32 %v934_v4, %v933_v44  ;;  %v976_v54 = vadd.f32 %v975_v0, %v974_v50  ;;  %v894_v10 = vmul.f32 %v2088_v11, %v2671_v49  ;;  %v938_v8 = vsel %vm443_vm0, %v873_v31, 0.0  ;;  %v2674_v44 = vld [vmem:[#allocation47_spill] sm:$0xff]  ;;  %v2675_v50 = vld [vmem:[#allocation48_spill] sm:$0xff]  ;;  %v2677_v49 = vld [vmem:[#allocation50_spill] sm:$0xff] }
  0x6a   :  { %v979_v7 = vsel %vm443_vm0, %v865_v51, 0.0  ;;  %v2225_v30 = vmul.f32 %v2088_v11, %v2672_v26  ;;  %v2229_v21 = vmul.f32 %v2088_v11, %v2673_v38  ;;  %v897_v19 = vmul.f32 %v2091_v41, %v2674_v44  ;;  %v2678_v38 = vld [vmem:[#allocation51_spill] sm:$0xff] }
  0x6b   :  { %v937_v15 = vadd.f32 %v936_v25, %v935_v13  ;;  %v978_v4 = vadd.f32 %v977_v6, %v976_v54  ;;  %v2235_v0 = vmul.f32 %v2091_v41, %v2675_v50  ;;  %v940_v31 = vsel %vm443_vm0, %v876_v37, 0.0  ;;  %v2676_v54 = vld [vmem:[#allocation49_spill] sm:$0xff] }
  0x6c   :  { %v981_v51 = vsel %vm443_vm0, %v868_v36, 0.0  ;;  %v2241_v33 = vmul.f32 %v2091_v41, %v1651_v56  ;;  %v900_v11 = vmul.f32 %v2094_v60, %v1665_v43  ;;  %v2247_v6 = vmul.f32 %v2094_v60, %v2676_v54  ;;  %v2679_v41 = vld [vmem:[#allocation52_spill] sm:$0xff] }
  0x6d   :  { %v939_v25 = vadd.f32 %v938_v8, %v937_v15  ;;  %v980_v13 = vadd.f32 %v979_v7, %v978_v4  ;;  %v2251_v26 = vmul.f32 %v2094_v60, %v2677_v49  ;;  %v942_v37 = vsel %vm443_vm0, %v879_v27, 0.0  ;;  %v2680_v49 = vld [vmem:[#allocation53_spill] sm:$0xff] }
  0x6e   :  { %v983_v36 = vsel %vm443_vm0, %v871_v63, 0.0  ;;  %v903_v56 = vmul.f32 %v2097_v9, %v2678_v38  ;;  %v2259_v43 = vmul.f32 %v2097_v9, %v2679_v41  ;;  %v944_v15 = vsel %vm443_vm0, %v882_v14, 0.0 }
  0x6f   :  { %v941_v8 = vadd.f32 %v940_v31, %v939_v25  ;;  %v982_v7 = vadd.f32 %v981_v51, %v980_v13  ;;  %v985_v4 = vsel %vm443_vm0, %v874_v58, 0.0  ;;  %v1021_v60 = vsel %vm443_vm0, %v2124_v39, 0.0 }
  0x70   :  { %v1022_v27 = vsel %vm443_vm0, %v2130_v32, 0.0  ;;  %v1024_v54 = vsel %vm443_vm0, %v2138_v53, 0.0  ;;  %v2271_v31 = vmul.f32 %v2097_v9, %v1728_v12  ;;  %v946_v14 = vsel %vm443_vm0, %v885_v48, 0.0 }
  0x71   :  { %v943_v63 = vadd.f32 %v942_v37, %v941_v8  ;;  %v984_v44 = vadd.f32 %v983_v36, %v982_v7  ;;  %v1023_v50 = vadd.f32 %v1022_v27, %v1021_v60  ;;  %v987_v58 = vsel %vm443_vm0, %v2164_v24, 0.0  ;;  %v2683_v27 = vld [vmem:[#allocation55_spill] sm:$0xff] }
  0x72   :  { %v1026_v39 = vsel %vm443_vm0, %v2143_v34, 0.0  ;;  %v906_v32 = vmul.f32 %v2100_v59, %v1743_v57  ;;  %v2282_v53 = vmul.f32 %v2100_v59, %v2680_v49  ;;  %v948_v12 = vsel %vm443_vm0, %v888_v18, 0.0 }
  0x73   :  { %v945_v51 = vadd.f32 %v944_v15, %v943_v63  ;;  %v986_v25 = vadd.f32 %v985_v4, %v984_v44  ;;  %v1025_v13 = vadd.f32 %v1024_v54, %v1023_v50  ;;  %v989_v48 = vsel %vm443_vm0, %v2173_v3, 0.0  ;;  %v2681_v4 = vld [vmem:[#allocation54_spill] sm:$0xff]  ;;  %v2684_v50 = vld [vmem:[#allocation56_spill] sm:$0xff]  ;;  %v2685_v54 = vld [vmem:[#allocation69_spill] sm:$0xff] }
  0x74   :  { %v1028_v9 = vsel %vm443_vm0, %v2148_v55, 0.0  ;;  %v2291_v34 = vmul.f32 %v2100_v59, %v1766_v2  ;;  %v909_v36 = vmul.f32 %v2104_v52, %v1777_v42  ;;  %v950_v38 = vsel %vm443_vm0, %v891_v23, 0.0 }
  0x75   :  { %v947_v57 = vadd.f32 %v946_v14, %v945_v51  ;;  %v988_v24 = vadd.f32 %v987_v58, %v986_v25  ;;  %v1027_v37 = vadd.f32 %v1026_v39, %v1025_v13  ;;  %v991_v18 = vsel %vm443_vm0, %v2180_v1, 0.0  ;;  %v2686_v39 = vld [vmem:[#allocation7_spill] sm:$0xff]  ;;  %v2687_v51 = vld [vmem:[#allocation57_spill] sm:$0xff] }
  0x76   :  { %v1030_v3 = vsel %vm443_vm0, %v2153_v22, 0.0  ;;  %v2302_v55 = vmul.f32 %v2104_v52, %v1790_v16  ;;  %v2306_v8 = vmul.f32 %v2104_v52, %v1801_v61  ;;  %v952_v42 = vsel %vm443_vm0, %v894_v10, 0.0  ;;  %v2682_v10 = vld [vmem:[#allocation6_spill] sm:$0xff] }
  0x77   :  { %v949_v2 = vadd.f32 %v948_v12, %v947_v57  ;;  %v990_v59 = vadd.f32 %v989_v48, %v988_v24  ;;  %v1029_v41 = vadd.f32 %v1028_v9, %v1027_v37  ;;  %v993_v23 = vsel %vm443_vm0, %v2189_v5, 0.0  ;;  %v2688_v12 = vld [vmem:[#allocation59_spill] sm:$0xff]  ;;  %v2689_v48 = vld [vmem:[#allocation70_spill] sm:$0xff]  ;;  %v2690_v24 = vld [vmem:[#allocation60_spill] sm:$0xff] }
  0x78   :  { %v1032_v1 = vsel %vm443_vm0, %v2159_v47, 0.0  ;;  %v912_v22 = vmul.f32 %v2107_v17, %v1814_v28  ;;  %v2317_v60 = vmul.f32 %v2107_v17, %v2681_v4  ;;  %v954_v61 = vsel %vm443_vm0, %v897_v19, 0.0 }
  0x79   :  { %v951_v16 = vadd.f32 %v950_v38, %v949_v2  ;;  %v992_v7 = vadd.f32 %v991_v18, %v990_v59  ;;  %v1031_v15 = vadd.f32 %v1030_v3, %v1029_v41  ;;  %v995_v52 = vsel %vm443_vm0, %v2197_v45, 0.0  ;;  %v2691_v2 = vld [vmem:[#allocation62_spill] sm:$0xff]  ;;  %v2692_v59 = vld [vmem:[#allocation71_spill] sm:$0xff] }
  0x7a   :  { %v1034_v5 = vsel %vm443_vm0, %v2682_v10, 0.0  ;;  %v2326_v47 = vmul.f32 %v2107_v17, %v2683_v27  ;;  %v915_v14 = vmul.f32 %v2685_v54, %v2684_v50  ;;  %v956_v58 = vsel %vm443_vm0, %v900_v11, 0.0 }
  0x7b   :  { %v953_v28 = vadd.f32 %v952_v42, %v951_v16  ;;  %v994_v63 = vadd.f32 %v993_v23, %v992_v7  ;;  %v1033_v44 = vadd.f32 %v1032_v1, %v1031_v15  ;;  %v997_v19 = vsel %vm443_vm0, %v2206_v20, 0.0  ;;  %v2693_v23 = vld [vmem:[#allocation65_spill] sm:$0xff] }
  0x7c   :  { %v1036_v45 = vsel %vm443_vm0, %v2686_v39, 0.0  ;;  %v2337_v25 = vmul.f32 %v2685_v54, %v2687_v51  ;;  %v918_v9 = vmul.f32 %v2689_v48, %v2688_v12  ;;  %v958_v57 = vsel %vm443_vm0, %v903_v56, 0.0  ;;  %v2397_v39 = vld [vmem:[%s2488_s1 + $0x10] sm:$0xff]  ;;  %v2695_v51 = vld [vmem:[#allocation68_spill] sm:$0xff] }
  0x7d   :  { %v955_v17 = vadd.f32 %v954_v61, %v953_v28  ;;  %v996_v13 = vadd.f32 %v995_v52, %v994_v63  ;;  %v1035_v49 = vadd.f32 %v1034_v5, %v1033_v44  ;;  %v999_v11 = vsel %vm443_vm0, %v2225_v30, 0.0  ;;  %v2384_v5 = vld [vmem:[%s2488_s1 + $0x20] sm:$0xff] }
  0x7e   :  { %v1038_v20 = vsel %vm443_vm0, %v2185_v35, 0.0  ;;  %v2348_v37 = vmul.f32 %v2689_v48, %v2690_v24  ;;  %v921_v41 = vmul.f32 %v2692_v59, %v2691_v2  ;;  %v960_v42 = vsel %vm443_vm0, %v906_v32, 0.0  ;;  %v2694_v35 = vld [vmem:[#allocation72_spill] sm:$0xff] }
  0x7f   :  { %v957_v38 = vadd.f32 %v956_v58, %v955_v17  ;;  %v998_v18 = vadd.f32 %v997_v19, %v996_v13  ;;  %v1037_v3 = vadd.f32 %v1036_v45, %v1035_v49  ;;  %v1001_v56 = vsel %vm443_vm0, %v2235_v0, 0.0  ;;  %v2373_v0 = vld [vmem:[%s2488_s1 + $0x8] sm:$0xff] }
  0x80   :  { %v1040_v30 = vsel %vm443_vm0, %v2192_v62, 0.0  ;;  %v924_v1 = vmul.f32 %v2694_v35, %v2693_v23  ;;  %v962_v4 = vsel %vm443_vm0, %v909_v36, 0.0  ;;  %v964_v61 = vsel %vm443_vm0, %v912_v22, 0.0  ;;  %v2368_v62 = vld [vmem:[%s2488_s1] sm:$0xff]  ;;  %v2378_v36 = vld [vmem:[%s2488_s1 + $0x18] sm:$0xff] }
  0x81   :  { %v959_v16 = vadd.f32 %v958_v57, %v957_v38  ;;  %v1000_v7 = vadd.f32 %v999_v11, %v998_v18  ;;  %v1039_v15 = vadd.f32 %v1038_v20, %v1037_v3  ;;  %v1003_v52 = vsel %vm443_vm0, %v2247_v6, 0.0  ;;  %v2696_v17 = vld [vmem:[#allocation5_spill] sm:$0xff]  ;;  %v2697_v23 = vld [vmem:[#allocation63_spill] sm:$0xff] }
  0x82   :  { %v1042_v32 = vsel %vm443_vm0, %v2200_v29, 0.0  ;;  %v966_v6 = vsel %vm443_vm0, %v915_v14, 0.0  ;;  %v968_v27 = vsel %vm443_vm0, %v918_v9, 0.0  ;;  %v970_v28 = vsel %vm443_vm0, %v921_v41, 0.0 }
  0x83   :  { %v961_v22 = vadd.f32 %v960_v42, %v959_v16  ;;  %v1002_v10 = vadd.f32 %v1001_v56, %v1000_v7  ;;  %v1041_v29 = vadd.f32 %v1040_v30, %v1039_v15  ;;  %v1005_v63 = vsel %vm443_vm0, %v2259_v43, 0.0  ;;  %v2698_v7 = vld [vmem:[#allocation66_spill] sm:$0xff] }
  0x84   :  { %v1044_v44 = vsel %vm443_vm0, %v2217_v40, 0.0  ;;  %v1007_v14 = vsel %vm443_vm0, %v2282_v53, 0.0  ;;  %v1046_v45 = vsel %vm443_vm0, %v2229_v21, 0.0  ;;  %v1068_v43 = vmul.f32 %v2695_v51, %v2368_v62  ;;  %v2410_v53 = vld [vmem:[%s2488_s1 + $0x28] sm:$0xff]  ;;  %s1183_s1 = smov [#allocation2]  }
  0x85   :  { %v963_v50 = vadd.f32 %v962_v4, %v961_v22  ;;  %v1004_v58 = vadd.f32 %v1003_v52, %v1002_v10  ;;  %v1043_v19 = vadd.f32 %v1042_v32, %v1041_v29  ;;  %v1069_v40 = vmul.f32 %v2696_v17, %v2373_v0  ;;  %s1136_s16 = sshll.u32 %s1183_s1, 4  ;;  %s1137_s16 = int_to_ptr.vmem [resolvable:$true] %s1136_s16 }
  0x86   :  { %v1082_v13 = vmul.f32 %v2378_v36, %v2695_v51  ;;  %v1083_v21 = vmul.f32 %v2384_v5, %v2696_v17  ;;  %v1009_v57 = vsel %vm443_vm0, %v2302_v55, 0.0  ;;  %v1011_v11 = vsel %vm443_vm0, %v2317_v60, 0.0  ;;  %s1158_s17 = scalar_lea.vmem %s1137_s16, 16  ;;  %s1162_s18 = scalar_lea.vmem %s1137_s16, 32 }
  0x87   :  { %v965_v49 = vadd.f32 %v964_v61, %v963_v50  ;;  %v1006_v12 = vadd.f32 %v1005_v63, %v1004_v58  ;;  %v1045_v9 = vadd.f32 %v1044_v44, %v1043_v19  ;;  %v1048_v20 = vsel %vm443_vm0, %v2241_v33, 0.0  ;;  %p1159_p0 = scmp.ne.s32.totalorder %s1137_s16, %s1158_s17  ;;  %p1163_p1 = scmp.lt.s32.totalorder %s1137_s16, %s1137_s16 }
  0x88   :  { %v1050_v24 = vsel %vm443_vm0, %v2251_v26, 0.0  ;;  %v1070_v2 = vmul.f32 %v2212_v46, %v2397_v39  ;;  %v1071_v41 = vsel %vm443_vm0, %v1068_v43, 0.0  ;;  %v1072_v42 = vsel %vm443_vm0, %v1069_v40, 0.0  ;;  %p1164_p2 = scmp.lt.s32.totalorder %s1162_s18, %s1158_s17 }
  0x89   :  { %v967_v38 = vadd.f32 %v966_v6, %v965_v49  ;;  %v1008_v18 = vadd.f32 %v1007_v14, %v1006_v12  ;;  %v1047_v3 = vadd.f32 %v1046_v45, %v1045_v9  ;;  %v1084_v55 = vmul.f32 %v2410_v53, %v2212_v46  ;;  %v2701_v49 = vld [vmem:[#allocation64_spill] sm:$0xff]  ;;  %v2702_v9 = vld [vmem:[#allocation67_spill] sm:$0xff] }
  0x8a   :  { %v1085_v60 = vsel %vm443_vm0, %v1082_v13, 0.0  ;;  %v1086_v26 = vsel %vm443_vm0, %v1083_v21, 0.0  ;;  %v922_v16 = vmul.f32 %v2692_v59, %v2697_v23  ;;  %v925_v15 = vmul.f32 %v2694_v35, %v2698_v7  ;;  %p1165_p3 = por %p1164_p2, %p1163_p1 }
  0x8b   :  { %v969_v56 = vadd.f32 %v968_v27, %v967_v38  ;;  %v1010_v33 = vadd.f32 %v1009_v57, %v1008_v18  ;;  %v1049_v30 = vadd.f32 %v1048_v20, %v1047_v3  ;;  %v1013_v4 = vsel %vm443_vm0, %v2337_v25, 0.0 }
  0x8c   :  { %v1052_v61 = vsel %vm443_vm0, %v2271_v31, 0.0  ;;  %v972_v46 = vsel %vm443_vm0, %v924_v1, 0.0  ;;  %v1015_v32 = vsel %vm443_vm0, %v2348_v37, 0.0  ;;  %v1054_v10 = vsel %vm443_vm0, %v2291_v34, 0.0  ;;  %v2699_v31 = vld [vmem:[#allocation58_spill] sm:$0xff]  ;;  %p1166_p4 = pnand %p1165_p3, %p1159_p0 }
  0x8d   :  { %v1012_v52 = vadd.f32 %v1011_v11, %v1010_v33  ;;  %v1051_v22 = vadd.f32 %v1050_v24, %v1049_v30  ;;  %v971_v6 = vadd.f32 %v970_v28, %v969_v56  ;;  %v1073_v29 = vadd.f32 %v1072_v42, %v1071_v41  ;;  %v2700_v28 = vld [vmem:[#allocation61_spill] sm:$0xff] }
  0x8e   :  { %v1087_v27 = vadd.f32 %v1086_v26, %v1085_v60  ;;  %v1074_v25 = vsel %vm443_vm0, %v1070_v2, 0.0  ;;  %v1088_v50 = vsel %vm443_vm0, %v1084_v55, 0.0  ;;  %v917_v1 = vmul.f32 %v2685_v54, %v2699_v31 }
  0x8f   :  { %v1014_v63 = vadd.f32 %v1013_v4, %v1012_v52  ;;  %v1053_v44 = vadd.f32 %v1052_v61, %v1051_v22  ;;  %v1017_v58 = vsel %vm443_vm0, %v922_v16, 0.0  ;;  %v1056_v37 = vsel %vm443_vm0, %v2306_v8, 0.0 }
  0x90   :  { %v920_v14 = vmul.f32 %v2689_v48, %v2700_v28  ;;  %v1019_v19 = vsel %vm443_vm0, %v925_v15, 0.0  ;;  %v973_v51 = vadd.f32 %v972_v46, %v971_v6  ;;  %v1058_v43 = vsel %vm443_vm0, %v2326_v47, 0.0 }
  0x91   :  { %v1016_v34 = vadd.f32 %v1015_v32, %v1014_v63  ;;  %v1055_v45 = vadd.f32 %v1054_v10, %v1053_v44  ;;  %v1075_v17 = vadd.f32 %v1074_v25, %v1073_v29  ;;  %v1089_v40 = vadd.f32 %v1088_v50, %v1087_v27 }
  0x92   :  { %v923_v12 = vmul.f32 %v2692_v59, %v2701_v49  ;;  %v1060_v8 = vsel %vm443_vm0, %v917_v1, 0.0  ;;  %v926_v48 = vmul.f32 %v2694_v35, %v2702_v9  ;;  %v1062_v11 = vsel %vm443_vm0, %v920_v14, 0.0 }
  0x93   :  { %v1018_v13 = vadd.f32 %v1017_v58, %v1016_v34  ;;  %v1057_v54 = vadd.f32 %v1056_v37, %v1055_v45  ;;  %v1076_v20 = vrot.slane %v1075_v17, 4  ;;  %v1090_v24 = vrot.slane %v1089_v40, 4 }
  0x94   :  { %v1096_v47 = vmul.f32 %v973_v51, %v2368_v62  ;;  %v1110_v3 = vmul.f32 %v2378_v36, %v973_v51  ;;  %v1064_v2 = vsel %vm443_vm0, %v923_v12, 0.0  ;;  %v1066_v35 = vsel %vm443_vm0, %v926_v48, 0.0 }
  0x95   :  { %v1020_v21 = vadd.f32 %v1019_v19, %v1018_v13  ;;  %v1059_v57 = vadd.f32 %v1058_v43, %v1057_v54  ;;  %v1077_v42 = vadd.f32 %v1076_v20, %v1075_v17  ;;  %v1091_v55 = vadd.f32 %v1090_v24, %v1089_v40 }
  0x96   :  { %v1099_v60 = vsel %vm443_vm0, %v1096_v47, 0.0  ;;  %v1113_v62 = vsel %vm443_vm0, %v1110_v3, 0.0 }
  0x97   :  { %v1061_v38 = vadd.f32 %v1060_v8, %v1059_v57  ;;  %v1097_v18 = vmul.f32 %v1020_v21, %v2373_v0  ;;  %v1111_v59 = vmul.f32 %v2384_v5, %v1020_v21  ;;  %v1078_v36 = vrot.slane %v1077_v42, 2 }
  0x98   :  { %v1092_v26 = vrot.slane %v1091_v55, 2 }
  0x99   :  { %v1063_v41 = vadd.f32 %v1062_v11, %v1061_v38  ;;  %v1100_v33 = vsel %vm443_vm0, %v1097_v18, 0.0  ;;  %v1114_v0 = vsel %vm443_vm0, %v1111_v59, 0.0  ;;  %v1079_v61 = vadd.f32 %v1078_v36, %v1077_v42 }
  0x9a   :  { %v1101_v5 = vadd.f32 %v1100_v33, %v1099_v60  ;;  %v1115_v23 = vadd.f32 %v1114_v0, %v1113_v62  ;;  %v1093_v46 = vadd.f32 %v1092_v26, %v1091_v55 }
  0x9b   :  { %v1065_v56 = vadd.f32 %v1064_v2, %v1063_v41  ;;  %v1080_v10 = vrot.slane %v1079_v61, 1 }
  0x9c   :  { %v1094_v29 = vrot.slane %v1093_v46, 1 }
  0x9d   :  { %v1067_v30 = vadd.f32 %v1066_v35, %v1065_v56  ;;  %v1081_v50 = vadd.f32 %v1080_v10, %v1079_v61 }
  0x9f   :  { %v1098_v16 = vmul.f32 %v1067_v30, %v2397_v39  ;;  %v1112_v7 = vmul.f32 %v2410_v53, %v1067_v30  ;;  %v1095_v39 = vadd.f32 %v1094_v29, %v1093_v46 }
  0xa1   :  { %v1102_v15 = vsel %vm443_vm0, %v1098_v16, 0.0  ;;  %v1116_v4 = vsel %vm443_vm0, %v1112_v7, 0.0  ;;  %v1125_v14 = vmul.f32 %v1095_v39, %v1081_v50 }
  0xa2   :  { %v1103_v52 = vadd.f32 %v1102_v15, %v1101_v5  ;;  %v1117_v32 = vadd.f32 %v1116_v4, %v1115_v23 }
  0xa4   :  { %v1104_v22 = vrot.slane %v1103_v52, 4  ;;  %v1118_v6 = vrot.slane %v1117_v32, 4 }
  0xa6   :  { %v1105_v27 = vadd.f32 %v1104_v22, %v1103_v52  ;;  %v1119_v63 = vadd.f32 %v1118_v6, %v1117_v32 }
  0xa8   :  { %v1106_v44 = vrot.slane %v1105_v27, 2  ;;  %v1120_v25 = vrot.slane %v1119_v63, 2 }
  0xaa   :  { %v1107_v31 = vadd.f32 %v1106_v44, %v1105_v27  ;;  %v1121_v53 = vadd.f32 %v1120_v25, %v1119_v63 }
  0xac   :  { %v1108_v1 = vrot.slane %v1107_v31, 1  ;;  %v1122_v58 = vrot.slane %v1121_v53, 1 }
  0xae   :  { %v1109_v37 = vadd.f32 %v1108_v1, %v1107_v31  ;;  %v1123_v28 = vadd.f32 %v1122_v58, %v1121_v53 }
  0xb0   :  { %v1124_v34 = vmul.f32 %v1123_v28, %v1109_v37 }
  0xb2   :  { %v1126_v19 = vsub.f32 %v1124_v34, %v1125_v14 }
  0xb4   :  { %v1127_v45 = vmul.f32 %v1126_v19, %v1126_v19 }
  0xb6   :  { %1129 = vst.msk [vmem:[#allocation2] sm:$0x1] %vm1128_vm1, %v1127_v45 }
  0xb7   :  { %1169 = shalt.err (!%p1166_p4)
}
  0xb8   :  { %s1170_s21 = scalar_lea.hbm %s2490_s3, 16 }
  0xb9   :  { %p1171_p5 = scmp.ne.s32.totalorder %s2490_s3, %s1170_s21  ;;  %p1174_p6 = scmp.lt.u32.totalorder %s1170_s21, %s2490_s3 }
  0xbb   :  { %p1176_p7 = pnand %p1174_p6, %p1171_p5 }
  0xbd   :  { %1179 = shalt.err (!%p1176_p7)
}
  0xbe   :  { %1139 = dma.vmem_to_hbm [thread:$0]  %s1137_s16, 16, %s2490_s3, [#allocation3]  }
  0xbf   :  { %1180 = dma.done.wait [#allocation3], 16  }
  0xc0   :  { %1181 = vsyncadd [#allocation3], 4294967280 }
  0xc1   :  { %1143 = vsyncpa [#allocation3], 1 }

</bundles_post_ra>
